<compile_context>
chip_gen: v6e
topology: v6e:2x2x1
jax: 0.10.0
libtpu: 0.0.40
codegen_flags: <defaults>
</compile_context>

<pallas_src>
import jax
import jax.numpy as jnp
from jax import lax
from jax.experimental import pallas as pl
from jax.experimental.pallas import tpu as pltpu

BN_EPS = 1e-5
_LANE = 128


def _round_up(x, m):
    return (x + m - 1) // m * m


def _tpu_vmem_capacity():
    """Best-effort physical VMEM query; conservative (v7x, 64 MiB) fallback."""
    cap = 64 * 1024 * 1024
    try:
        info_cap = int(pltpu.get_tpu_info().vmem_capacity_bytes)
        if info_cap > 0:
            cap = info_cap
    except Exception:
        pass
    return cap


def _const_spec(shape, index_map):
    """Constant-index operand spec, single-buffered to save VMEM."""
    buffered = getattr(pl, "Buffered", None)
    if buffered is not None:
        try:
            return pl.BlockSpec(shape, index_map, pipeline_mode=buffered(1))
        except TypeError:
            pass
    return pl.BlockSpec(shape, index_map)


# ----------------------------------------------------------------------------
# Pass 1: h = ReLU(x @ W1 + b1); emit h (bf16) + per-column sum / sum-of-squares
# ----------------------------------------------------------------------------
def _stats_h_kernel(x_ref, w1_ref, b1_ref, h_ref, sum_ref, ssq_ref):
    @pl.when(pl.program_id(1) == 0)
    def _init():
        sum_ref[...] = jnp.zeros_like(sum_ref)
        ssq_ref[...] = jnp.zeros_like(ssq_ref)

    # bf16 MXU operands, f32 accumulation
    h = jnp.dot(x_ref[...], w1_ref[...], preferred_element_type=jnp.float32)
    h = jnp.maximum(h + b1_ref[...], 0.0)

    h_ref[...] = h.astype(h_ref.dtype)

    # Batch-padding rows (x == 0) contribute exactly ReLU(b1) per column;
    # that constant is subtracted on the host, so no in-kernel mask is needed.
    sum_ref[...] += jnp.sum(h, axis=0, keepdims=True)[None]
    ssq_ref[...] += jnp.sum(h * h, axis=0, keepdims=True)[None]


# ----------------------------------------------------------------------------
# Pass 2: folded BN affine + classifier matmul + box matmul (+ sigmoid on the
#         narrow box slab only).  Two lane-dense, 128-padded bf16 outputs.
# ----------------------------------------------------------------------------
def _head_kernel(h_ref, s_ref, t_ref, wc_ref, bc_ref, wb_ref, bb_ref,
                 cls_ref, box_ref):
    hn = h_ref[...].astype(jnp.float32) * s_ref[...] + t_ref[...]
    hn = hn.astype(jnp.bfloat16)

    cls = jnp.dot(hn, wc_ref[...], preferred_element_type=jnp.float32) + bc_ref[...]
    cls_ref[...] = cls.astype(cls_ref.dtype)

    zb = jnp.dot(hn, wb_ref[...], preferred_element_type=jnp.float32) + bb_ref[...]
    # sigmoid only on the box slab: exp rides the EUP, approx reciprocal too.
    box = pl.reciprocal(1.0 + jnp.exp(-zb), approx=True)
    box_ref[...] = box.astype(box_ref.dtype)


# ----------------------------------------------------------------------------
# Host-side weight packing (hoisted out of the per-step path).
# ----------------------------------------------------------------------------
def pack_head_params(params):
    w1, b1, gamma, beta, wc, bc, wb, bb = params
    f32, bf16 = jnp.float32, jnp.bfloat16
    E, H = w1.shape
    QC = wc.shape[1]
    Q4 = wb.shape[1]
    EP, HP = _round_up(E, _LANE), _round_up(H, _LANE)
    QCP, Q4P = _round_up(QC, _LANE), _round_up(Q4, _LANE)

    w1p = jnp.zeros((EP, HP), bf16).at[:E, :H].set(w1.astype(bf16))
    b1p = jnp.zeros((1, HP), f32).at[:, :H].set(b1.reshape(1, H))
    gp = jnp.zeros((1, HP), f32).at[:, :H].set(gamma.reshape(1, H))
    bp = jnp.zeros((1, HP), f32).at[:, :H].set(beta.reshape(1, H))
    wcp = jnp.zeros((HP, QCP), bf16).at[:H, :QC].set(wc.astype(bf16))
    bcp = jnp.zeros((1, QCP), f32).at[:, :QC].set(bc.reshape(1, QC))
    wbp = jnp.zeros((HP, Q4P), bf16).at[:H, :Q4].set(wb.astype(bf16))
    bbp = jnp.zeros((1, Q4P), f32).at[:, :Q4].set(bb.reshape(1, Q4))
    return (w1p, b1p, gp, bp, wcp, bcp, wbp, bbp)


# ----------------------------------------------------------------------------
# Host wrapper
# ----------------------------------------------------------------------------
def object_detection_head(features, packed, num_queries, num_classes,
                          *, batch_tile=None):
    w1p, b1p, gp, bp, wcp, bcp, wbp, bbp = packed
    f32, bf16 = jnp.float32, jnp.bfloat16

    B, E = features.shape
    EP, HP = w1p.shape
    QCP = wcp.shape[1]
    Q4P = wbp.shape[1]
    QC = num_queries * num_classes
    Q4 = num_queries * 4

    # generation-aware VMEM budget and batch tile
    cap = _tpu_vmem_capacity()
    vmem_limit = min(cap * 3 // 4, 100 * 1024 * 1024)
    if batch_tile is None:
        batch_tile = 512 if cap >= 96 * 1024 * 1024 else 256

    # Batch tile: multiple of 16 (bf16 sublane packing, v5e) and of 128 when
    # the batch is big enough to fill MXU rows (batch_tile is 256/512).
    TB = min(batch_tile, _round_up(B, 16))
    if B > TB:
        BP = _round_up(B, 2 * TB)   # even #tiles -> pass-1 splits over 2 TCs
        NC = 2
    else:
        BP = TB
        NC = 1
    n_tiles = BP // TB
    tpc = n_tiles // NC

    # pad/cast the activations directly in bf16 (no f32 intermediate)
    xp = jnp.zeros((BP, EP), bf16).at[:B, :E].set(features.astype(bf16))

    # ---- pass 1: h + BN batch statistics (core axis parallel, batch axis arbitrary)
    h_bf, sum_parts, ssq_parts = pl.pallas_call(
        _stats_h_kernel,
        out_shape=(jax.ShapeDtypeStruct((BP, HP), bf16),
                   jax.ShapeDtypeStruct((NC, 1, HP), f32),
                   jax.ShapeDtypeStruct((NC, 1, HP), f32)),
        grid=(NC, tpc),
        in_specs=[pl.BlockSpec((TB, EP), lambda c, i: (c * tpc + i, 0)),
                  _const_spec((EP, HP), lambda c, i: (0, 0)),
                  _const_spec((1, HP), lambda c, i: (0, 0))],
        out_specs=(pl.BlockSpec((TB, HP), lambda c, i: (c * tpc + i, 0)),
                   pl.BlockSpec((1, 1, HP), lambda c, i: (c, 0, 0)),
                   pl.BlockSpec((1, 1, HP), lambda c, i: (c, 0, 0))),
        compiler_params=pltpu.CompilerParams(
            dimension_semantics=("parallel", "arbitrary"),
            vmem_limit_bytes=vmem_limit),
    )(xp, w1p, b1p)

    # tiny host math: remove padding-row contributions, fold BN into one affine
    pad_rows = float(BP - B)
    relu_b1 = jnp.maximum(b1p, 0.0)
    col_sum = jnp.sum(sum_parts, axis=0) - pad_rows * relu_b1
    col_ssq = jnp.sum(ssq_parts, axis=0) - pad_rows * (relu_b1 * relu_b1)
    mean = col_sum / B
    var = jnp.maximum(col_ssq / B - mean * mean, 0.0)   # biased (training) var
    s = gp * lax.rsqrt(var + BN_EPS)
    t = bp - mean * s

    # ---- pass 2: fully parallel batch-tiled head
    cls_pad, box_pad = pl.pallas_call(
        _head_kernel,
        out_shape=(jax.ShapeDtypeStruct((BP, QCP), bf16),
                   jax.ShapeDtypeStruct((BP, Q4P), bf16)),
        grid=(n_tiles,),
        in_specs=[pl.BlockSpec((TB, HP), lambda i: (i, 0)),
                  _const_spec((1, HP), lambda i: (0, 0)),
                  _const_spec((1, HP), lambda i: (0, 0)),
                  _const_spec((HP, QCP), lambda i: (0, 0)),
                  _const_spec((1, QCP), lambda i: (0, 0)),
                  _const_spec((HP, Q4P), lambda i: (0, 0)),
                  _const_spec((1, Q4P), lambda i: (0, 0))],
        out_specs=(pl.BlockSpec((TB, QCP), lambda i: (i, 0)),
                   pl.BlockSpec((TB, Q4P), lambda i: (i, 0))),
        compiler_params=pltpu.CompilerParams(
            dimension_semantics=("parallel",),
            vmem_limit_bytes=vmem_limit),
    )(h_bf, s, t, wcp, bcp, wbp, bbp)

    class_logits = cls_pad[:B, :QC].astype(f32).reshape(B, num_queries, num_classes)
    box_coordinates = box_pad[:B, :Q4].astype(f32).reshape(B, num_queries, 4)
    return class_logits, box_coordinates


# ----------------------------------------------------------------------------
# Pure-JAX reference (same bf16-operand / f32-accumulate precision policy)
# ----------------------------------------------------------------------------
def _reference(features, params, num_queries, num_classes):
    w1, b1, gamma, beta, wc, bc, wb, bb = params
    f32, bf16 = jnp.float32, jnp.bfloat16
    B = features.shape[0]
    h = jnp.dot(features.astype(bf16), w1.astype(bf16),
                preferred_element_type=f32) + b1.reshape(1, -1)
    h = jnp.maximum(h, 0.0)
    mean = jnp.mean(h, axis=0, keepdims=True)
    var = jnp.maximum(jnp.mean(h * h, axis=0, keepdims=True) - mean * mean, 0.0)
    s = gamma.reshape(1, -1) * lax.rsqrt(var + BN_EPS)
    t = beta.reshape(1, -1) - mean * s
    hn = h * s + t
    logits = jnp.dot(hn.astype(bf16), wc.astype(bf16),
                     preferred_element_type=f32) + bc.reshape(1, -1)
    z = jnp.dot(hn.astype(bf16), wb.astype(bf16),
                preferred_element_type=f32) + bb.reshape(1, -1)
    boxes = jax.nn.sigmoid(z)
    return (logits.reshape(B, num_queries, num_classes),
            boxes.reshape(B, num_queries, 4))


def init_params(key, embedding_size, hidden_dim, num_classes, num_queries):
    ks = jax.random.split(key, 6)
    # Weights stored (in, out); PyTorch nn.Linear stores the transpose.
    w1 = jax.random.normal(ks[0], (embedding_size, hidden_dim), jnp.float32) * 0.05
    b1 = jax.random.normal(ks[1], (1, hidden_dim), jnp.float32) * 0.01
    gamma = jnp.ones((1, hidden_dim), jnp.float32)
    beta = jnp.zeros((1, hidden_dim), jnp.float32)
    wc = jax.random.normal(ks[2], (hidden_dim, num_classes * num_queries), jnp.float32) * 0.05
    bc = jax.random.normal(ks[3], (1, num_classes * num_queries), jnp.float32) * 0.01
    wb = jax.random.normal(ks[4], (hidden_dim, 4 * num_queries), jnp.float32) * 0.05
    bb = jax.random.normal(ks[5], (1, 4 * num_queries), jnp.float32) * 0.01
    return (w1, b1, gamma, beta, wc, bc, wb, bb)


if __name__ == "__main__":
    # Small, module-consistent shapes (a realistic DETR head would be
    # hidden_dim=768, num_queries=100, num_classes~92).
    batch = 8
    embedding_size = 32
    hidden_dim = 32
    num_classes = 8
    num_queries = 4

    key = jax.random.PRNGKey(0)
    k_feat, k_par = jax.random.split(key)
    features = jax.random.normal(k_feat, (batch, embedding_size), jnp.float32)
    params = init_params(k_par, embedding_size, hidden_dim, num_classes, num_queries)

    packed = pack_head_params(params)          # hoisted out of the per-step path
    class_logits, box_coords = object_detection_head(
        features, packed, num_queries, num_classes)
    jax.block_until_ready((class_logits, box_coords))

    ref_logits, ref_boxes = _reference(features, params, num_queries, num_classes)

    assert class_logits.shape == (batch, num_queries, num_classes)
    assert box_coords.shape == (batch, num_queries, 4)
    assert bool(jnp.all(jnp.isfinite(class_logits)))
    assert bool(jnp.all(jnp.isfinite(box_coords)))
    assert bool(jnp.all((box_coords >= -1e-2) & (box_coords <= 1.0 + 1e-2)))
    assert bool(jnp.allclose(class_logits, ref_logits, atol=3e-2, rtol=3e-2))
    assert bool(jnp.allclose(box_coords, ref_boxes, atol=3e-2, rtol=3e-2))
    print("KERNEL_OK")
</pallas_src>

<mosaic_0001>
module attributes {stable_mosaic.version = 11 : i64} {
  func.func @_stats_h_kernel(%arg0: i32, %arg1: i32, %arg2: memref<16x128xbf16, #tpu.memory_space<vmem>>, %arg3: memref<128x128xbf16, #tpu.memory_space<vmem>>, %arg4: memref<1x128xf32, #tpu.memory_space<vmem>>, %arg5: memref<16x128xbf16, #tpu.memory_space<vmem>>, %arg6: memref<1x1x128xf32, #tpu.memory_space<vmem>>, %arg7: memref<1x1x128xf32, #tpu.memory_space<vmem>>) attributes {dimension_semantics = [#tpu.dimension_semantics<parallel>, #tpu.dimension_semantics<arbitrary>], iteration_bounds = array<i64: 1, 1>, scalar_prefetch = 0 : i64, scratch_operands = 0 : i64, tpu.core_type = #tpu.core_type<tc>, window_params = [{transform_indices = @transform_0, window_bounds = array<i64: 16, 128>}, {pipeline_mode = #tpu.pipeline_mode<synchronous>, transform_indices = @transform_1, window_bounds = array<i64: 128, 128>}, {pipeline_mode = #tpu.pipeline_mode<synchronous>, transform_indices = @transform_2, window_bounds = array<i64: 1, 128>}, {transform_indices = @transform_3, window_bounds = array<i64: 16, 128>}, {transform_indices = @transform_4, window_bounds = array<i64: 1, 1, 128>}, {transform_indices = @transform_5, window_bounds = array<i64: 1, 1, 128>}]} {
    %c0_i32 = arith.constant 0 : i32
    %0 = arith.cmpi eq, %arg1, %c0_i32 : i32
    %1 = arith.extui %0 : i1 to i32
    %c0_i32_0 = arith.constant 0 : i32
    %2 = arith.cmpi ne, %1, %c0_i32_0 : i32
    scf.if %2 {
      %cst_23 = arith.constant 0.000000e+00 : f32
      %26 = vector.broadcast %cst_23 : f32 to vector<1x1x128xf32>
      %c0_24 = arith.constant 0 : index
      %c0_25 = arith.constant 0 : index
      %c0_26 = arith.constant 0 : index
      %27 = vector.load %arg6[%c0_24, %c0_25, %c0_26] : memref<1x1x128xf32, #tpu.memory_space<vmem>>, vector<1x1x128xf32>
      tpu.vector_store %arg6[%c0_24, %c0_25, %c0_26], %26 {strides = array<i32>} : memref<1x1x128xf32, #tpu.memory_space<vmem>>, vector<1x1x128xf32>,
      %cst_27 = arith.constant 0.000000e+00 : f32
      %28 = vector.broadcast %cst_27 : f32 to vector<1x1x128xf32>
      %c0_28 = arith.constant 0 : index
      %c0_29 = arith.constant 0 : index
      %c0_30 = arith.constant 0 : index
      %29 = vector.load %arg7[%c0_28, %c0_29, %c0_30] : memref<1x1x128xf32, #tpu.memory_space<vmem>>, vector<1x1x128xf32>
      tpu.vector_store %arg7[%c0_28, %c0_29, %c0_30], %28 {strides = array<i32>} : memref<1x1x128xf32, #tpu.memory_space<vmem>>, vector<1x1x128xf32>,
    } else {
    }
    %c0 = arith.constant 0 : index
    %c0_1 = arith.constant 0 : index
    %3 = vector.load %arg2[%c0, %c0_1] : memref<16x128xbf16, #tpu.memory_space<vmem>>, vector<16x128xbf16>
    %c0_2 = arith.constant 0 : index
    %c0_3 = arith.constant 0 : index
    %4 = vector.load %arg3[%c0_2, %c0_3] : memref<128x128xbf16, #tpu.memory_space<vmem>>, vector<128x128xbf16>
    %cst = arith.constant dense<0.000000e+00> : vector<16x128xf32>
    %5 = tpu.matmul %3, %4, %cst {dimension_numbers = #tpu.dot_dimension_numbers<[1], [0], [0], [1], [0, 0, 1, 1], [], []>} : vector<16x128xbf16>, vector<128x128xbf16>, vector<16x128xf32> -> vector<16x128xf32>
    %c0_4 = arith.constant 0 : index
    %c0_5 = arith.constant 0 : index
    %6 = vector.load %arg4[%c0_4, %c0_5] : memref<1x128xf32, #tpu.memory_space<vmem>>, vector<1x128xf32>
    %7 = vector.broadcast %6 : vector<1x128xf32> to vector<16x128xf32>
    %8 = arith.addf %5, %7 : vector<16x128xf32>
    %cst_6 = arith.constant 0.000000e+00 : f32
    %9 = vector.broadcast %cst_6 : f32 to vector<16x128xf32>
    %10 = arith.maximumf %8, %9 : vector<16x128xf32>
    %11 = arith.truncf %10 : vector<16x128xf32> to vector<16x128xbf16>
    %c0_7 = arith.constant 0 : index
    %c0_8 = arith.constant 0 : index
    %12 = vector.load %arg5[%c0_7, %c0_8] : memref<16x128xbf16, #tpu.memory_space<vmem>>, vector<16x128xbf16>
    tpu.vector_store %arg5[%c0_7, %c0_8], %11 {strides = array<i32>} : memref<16x128xbf16, #tpu.memory_space<vmem>>, vector<16x128xbf16>,
    %c0_9 = arith.constant 0 : index
    %c0_10 = arith.constant 0 : index
    %c0_11 = arith.constant 0 : index
    %13 = vector.load %arg6[%c0_9, %c0_10, %c0_11] : memref<1x1x128xf32, #tpu.memory_space<vmem>>, vector<1x1x128xf32>
    %cst_12 = arith.constant dense<0.000000e+00> : vector<128xf32>
    %14 = vector.multi_reduction <add>, %10, %cst_12 [0] : vector<16x128xf32> to vector<128xf32>
    %15 = vector.shape_cast %14 : vector<128xf32> to vector<1x128xf32>
    %16 = vector.shape_cast %15 : vector<1x128xf32> to vector<1x1x128xf32>
    %17 = arith.addf %13, %16 : vector<1x1x128xf32>
    %c0_13 = arith.constant 0 : index
    %c0_14 = arith.constant 0 : index
    %c0_15 = arith.constant 0 : index
    %18 = vector.load %arg6[%c0_13, %c0_14, %c0_15] : memref<1x1x128xf32, #tpu.memory_space<vmem>>, vector<1x1x128xf32>
    tpu.vector_store %arg6[%c0_13, %c0_14, %c0_15], %17 {strides = array<i32>} : memref<1x1x128xf32, #tpu.memory_space<vmem>>, vector<1x1x128xf32>,
    %c0_16 = arith.constant 0 : index
    %c0_17 = arith.constant 0 : index
    %c0_18 = arith.constant 0 : index
    %19 = vector.load %arg7[%c0_16, %c0_17, %c0_18] : memref<1x1x128xf32, #tpu.memory_space<vmem>>, vector<1x1x128xf32>
    %20 = arith.mulf %10, %10 : vector<16x128xf32>
    %cst_19 = arith.constant dense<0.000000e+00> : vector<128xf32>
    %21 = vector.multi_reduction <add>, %20, %cst_19 [0] : vector<16x128xf32> to vector<128xf32>
    %22 = vector.shape_cast %21 : vector<128xf32> to vector<1x128xf32>
    %23 = vector.shape_cast %22 : vector<1x128xf32> to vector<1x1x128xf32>
    %24 = arith.addf %19, %23 : vector<1x1x128xf32>
    %c0_20 = arith.constant 0 : index
    %c0_21 = arith.constant 0 : index
    %c0_22 = arith.constant 0 : index
    %25 = vector.load %arg7[%c0_20, %c0_21, %c0_22] : memref<1x1x128xf32, #tpu.memory_space<vmem>>, vector<1x1x128xf32>
    tpu.vector_store %arg7[%c0_20, %c0_21, %c0_22], %24 {strides = array<i32>} : memref<1x1x128xf32, #tpu.memory_space<vmem>>, vector<1x1x128xf32>,
    return
  }
  func.func @transform_0(%arg0: i32, %arg1: i32) -> (i32, i32) {
    %c1_i32 = arith.constant 1 : i32
    %0 = arith.muli %arg0, %c1_i32 : i32
    %1 = arith.addi %0, %arg1 : i32
    %c0_i32 = arith.constant 0 : i32
    %c0_i32_0 = arith.constant 0 : i32
    return %1, %c0_i32 : i32, i32
  }
  func.func @transform_1(%arg0: i32, %arg1: i32) -> (i32, i32) {
    %c0_i32 = arith.constant 0 : i32
    %c0_i32_0 = arith.constant 0 : i32
    %c0_i32_1 = arith.constant 0 : i32
    return %c0_i32, %c0_i32_0 : i32, i32
  }
  func.func @transform_2(%arg0: i32, %arg1: i32) -> (i32, i32) {
    %c0_i32 = arith.constant 0 : i32
    %c0_i32_0 = arith.constant 0 : i32
    %c0_i32_1 = arith.constant 0 : i32
    return %c0_i32, %c0_i32_0 : i32, i32
  }
  func.func @transform_3(%arg0: i32, %arg1: i32) -> (i32, i32) {
    %c1_i32 = arith.constant 1 : i32
    %0 = arith.muli %arg0, %c1_i32 : i32
    %1 = arith.addi %0, %arg1 : i32
    %c0_i32 = arith.constant 0 : i32
    %c0_i32_0 = arith.constant 0 : i32
    return %1, %c0_i32 : i32, i32
  }
  func.func @transform_4(%arg0: i32, %arg1: i32) -> (i32, i32, i32) {
    %c0_i32 = arith.constant 0 : i32
    %c0_i32_0 = arith.constant 0 : i32
    %c0_i32_1 = arith.constant 0 : i32
    return %arg0, %c0_i32, %c0_i32_0 : i32, i32, i32
  }
  func.func @transform_5(%arg0: i32, %arg1: i32) -> (i32, i32, i32) {
    %c0_i32 = arith.constant 0 : i32
    %c0_i32_0 = arith.constant 0 : i32
    %c0_i32_1 = arith.constant 0 : i32
    return %arg0, %c0_i32, %c0_i32_0 : i32, i32, i32
  }
}

</mosaic_0001>

<bundles_post_ra>
// kernel: tpu_custom_call.1
= control target key start
LH: loop header
LB: loop body
LE: loop exit
PB: predicated region body
PF: predicated region fallthrough
CT: control target
= control target key end

     0   :  { %11 = vsyncpa [#allocation3], 0  ;;  %s505_s0 = inlined_call_operand.hbm [shape: bf16[16,128], index: 0, kind: input, shape index: {}]   ;;  %s506_s1 = inlined_call_operand.hbm [shape: bf16[128,128], index: 1, kind: input, shape index: {}]   ;;  %s507_s2 = inlined_call_operand.vmem [shape: f32[1,128], index: 2, kind: input, shape index: {}]   ;;  %s508_s3 = inlined_call_operand.hbm [shape: bf16[16,128], index: 3, kind: output, shape index: {0}]   ;;  %s509_s4 = inlined_call_operand.hbm [shape: f32[1,1,128], index: 4, kind: output, shape index: {1}]   ;;  %s510_s5 = inlined_call_operand.hbm [shape: f32[1,1,128], index: 5, kind: output, shape index: {2}]  }
   0x1   :  { %12 = vsyncpa [#allocation6], 0 }
   0x2   :  { %13 = vsyncpa [#allocation4], 0 }
   0x3   :  { %14 = vsyncpa [#allocation9], 0  ;;  %s439_s18 = smov [#allocation2]  }
   0x4   :  { %s24_s19 = sshll.u32 %s439_s18, 4  ;;  %s25_s19 = int_to_ptr.vmem [resolvable:$true] %s24_s19 }
   0x5   :  { %s339_s20 = scalar_lea.vmem %s25_s19, 128  ;;  %p344_p1 = scmp.lt.s32.totalorder %s25_s19, %s25_s19 }
   0x6   :  { %p340_p0 = scmp.ne.s32.totalorder %s25_s19, %s339_s20  ;;  %p345_p2 = scmp.lt.s32.totalorder %s339_s20, %s339_s20 }
   0x8   :  { %p346_p3 = por %p345_p2, %p344_p1 }
   0xa   :  { %p347_p4 = pnand %p346_p3, %p340_p0 }
   0xc   :  { %350 = shalt.err (!%p347_p4)
}
   0xd   :  { %s440_s21 = smov 64   ;;  %s441_s22 = smov 4  }
   0xe   :  { %30 = dma.hbm_to_vmem [thread:$0]  %s505_s0, 128, %s25_s19, [#allocation3], %s440_s21, %s440_s21, %s441_s22  }
   0xf   :  { %s442_s25 = smov [#allocation5]  }
  0x10   :  { %s36_s26 = sshll.u32 %s442_s25, 4  ;;  %s37_s26 = int_to_ptr.vmem [resolvable:$true] %s36_s26 }
  0x11   :  { %s359_s27 = scalar_lea.vmem %s37_s26, 1024  ;;  %p364_p6 = scmp.lt.s32.totalorder %s37_s26, %s37_s26 }
  0x12   :  { %p360_p5 = scmp.ne.s32.totalorder %s37_s26, %s359_s27  ;;  %p365_p7 = scmp.lt.s32.totalorder %s359_s27, %s359_s27 }
  0x14   :  { %p366_p8 = por %p365_p7, %p364_p6 }
  0x16   :  { %p367_p9 = pnand %p366_p8, %p360_p5 }
  0x18   :  { %370 = shalt.err (!%p367_p9)
}
  0x19   :  { %42 = dma.hbm_to_vmem [thread:$0]  %s506_s1, 1024, %s37_s26, [#allocation6], %s440_s21, %s440_s21, %s441_s22  }
  0x1a   :  { %431 = dma.done.wait [#allocation3], 128  }
  0x1b   :  { %432 = vsyncadd [#allocation3], 4294967168 }
  0x1c   :  { %433 = dma.done.wait [#allocation6], 1024  }
  0x1d   :  { %434 = vsyncadd [#allocation6], 4294966272  ;;  %v443_v0 = vmov 0.0   ;;  %vm444_vm0 = vmmov 0   ;;  %v322_v1 = vld [vmem:[#allocation5 + $0x38] sm:$0xff]   ;;  %v323_v2 = vld [vmem:[#allocation5 + $0x30] sm:$0xff]  }
  0x1e   :  { %293 = vmatprep.subr.bf16.mxu0 %v443_v0  ;;  %60 = vst [vmem:[#allocation8] sm:$0x1] %v443_v0  ;;  %61 = vst [vmem:[#allocation10] sm:$0x1] %v443_v0  ;;  %309 = vmatprep.mubr.msk.bf16.mxu0 %vm444_vm0, %v443_v0  ;;  %v324_v3 = vld [vmem:[#allocation5 + $0x28] sm:$0xff]   ;;  %v325_v4 = vld [vmem:[#allocation5 + $0x20] sm:$0xff]  }
  0x1f   :  { %294 = vmatpush3.bf16.msra.mxu0 %v322_v1  ;;  %v326_v5 = vld [vmem:[#allocation5 + $0x18] sm:$0xff]   ;;  %v327_v6 = vld [vmem:[#allocation5 + $0x10] sm:$0xff]   ;;  %v328_v7 = vld [vmem:[#allocation5 + $0x8] sm:$0xff]   ;;  %s445_s30 = smov [#allocation7]  }
  0x20   :  { %295 = vmatprep.subr.bf16.mxu0 %v443_v0  ;;  %v329_v8 = vld [vmem:[#allocation5] sm:$0xff]   ;;  %v330_v9 = vld [vmem:[#allocation2] sm:$0xff]   ;;  %s225_s6 = sshll.u32 %s445_s30, 4  ;;  %s226_s6 = int_to_ptr.vmem [resolvable:$true] %s225_s6 }
  0x21   :  { %v265_v10 = vld [vmem:[%s507_s2] ss:$0 sm:$0xff]  ;;  %s371_s7 = scalar_lea.vmem %s226_s6, 128  ;;  %p376_p11 = scmp.lt.s32.totalorder %s226_s6, %s226_s6 }
  0x22   :  { %p372_p10 = scmp.ne.s32.totalorder %s226_s6, %s371_s7  ;;  %p377_p12 = scmp.lt.s32.totalorder %s371_s7, %s371_s7 }
  0x23   :  { %296 = vmatpush3.bf16.msra.mxu0 %v323_v2 }
  0x24   :  { %297 = vmatprep.subr.bf16.mxu0 %v443_v0  ;;  %p378_p13 = por %p377_p12, %p376_p11 }
  0x26   :  { %p379_p0 = pnand %p378_p13, %p372_p10 }
  0x27   :  { %298 = vmatpush3.bf16.msra.mxu0 %v324_v3 }
  0x28   :  { %299 = vmatprep.subr.bf16.mxu0 %v443_v0 }
  0x2b   :  { %300 = vmatpush3.bf16.msra.mxu0 %v325_v4 }
  0x2c   :  { %301 = vmatprep.subr.bf16.mxu0 %v443_v0 }
  0x2f   :  { %302 = vmatpush3.bf16.msra.mxu0 %v326_v5 }
  0x30   :  { %303 = vmatprep.subr.bf16.mxu0 %v443_v0 }
  0x33   :  { %304 = vmatpush3.bf16.msra.mxu0 %v327_v6 }
  0x34   :  { %305 = vmatprep.subr.bf16.mxu0 %v443_v0 }
  0x37   :  { %306 = vmatpush3.bf16.msra.mxu0 %v328_v7 }
  0x38   :  { %307 = vmatprep.subr.bf16.mxu0 %v443_v0 }
  0x3b   :  { %308 = vmatpush3.bf16.msra.mxu0 %v329_v8 }
  0x3e   :  { %310 = vmatmul.mubr.bf16.vlgmr.msra.gmra.mxu0 %v330_v9 }
  0xfe   :  { %v175_v11 = vpop.f32.mrf.mxu0 }
  0xff   :  { %v176_v12 = vadd.f32 %v265_v10, %v175_v11 }
 0x100   :  { %v311_v13 = vpop.f32.mrf.mxu0 }
 0x101   :  { %v182_v15 = vmax.f32 %v176_v12, 0.0 }
 0x102   :  { %v178_v14 = vpop.f32.mrf.mxu0 }
 0x103   :  { %v179_v16 = vadd.f32 %v265_v10, %v178_v14  ;;  %v205_v19 = vmul.f32 %v182_v15, %v182_v15 }
 0x104   :  { %v312_v17 = vpop.f32.mrf.mxu0 }
 0x105   :  { %v183_v18 = vmax.f32 %v179_v16, 0.0 }
 0x107   :  { %v195_v20 = vadd.f32 %v183_v18, %v182_v15  ;;  %v206_v21 = vmul.f32 %v183_v18, %v183_v18  ;;  %v282_v22 = vpack.c.bf16 %v183_v18, %v182_v15 }
 0x109   :  { %v196_v23 = vrot.slane %v195_v20, 4  ;;  %v207_v24 = vadd.f32 %v206_v21, %v205_v19  ;;  %283 = vst [vmem:[#allocation7] sm:$0xff] %v282_v22  }
 0x10a   :  { %382 = shalt.err (!%p379_p0)
}
 0x10b   :  { %231 = dma.vmem_to_hbm [thread:$0]  %s226_s6, 128, %s508_s3, [#allocation4], %s440_s21, %s440_s21, %s441_s22   ;;  %v197_v25 = vadd.f32 %v196_v23, %v195_v20  ;;  %v208_v26 = vrot.slane %v207_v24, 4  ;;  %v194_v33 = vld [vmem:[#allocation8] sm:$0x1] }
 0x10c   :  { %s446_s9 = smov [#allocation8]   ;;  %v204_v36 = vld [vmem:[#allocation10] sm:$0x1]  ;;  %s447_s11 = smov [#allocation10]  }
 0x10d   :  { %v198_v27 = vrot.slane %v197_v25, 2  ;;  %v209_v28 = vadd.f32 %v208_v26, %v207_v24  ;;  %s238_s10 = sshll.u32 %s446_s9, 4  ;;  %s248_s12 = sshll.u32 %s447_s11, 4  ;;  %s239_s10 = int_to_ptr.vmem [resolvable:$true] %s238_s10  ;;  %s249_s12 = int_to_ptr.vmem [resolvable:$true] %s248_s12 }
 0x10e   :  { %s391_s3 = scalar_lea.vmem %s239_s10, 16  ;;  %s395_s13 = scalar_lea.vmem %s239_s10, 32 }
 0x10f   :  { %v199_v29 = vadd.f32 %v198_v27, %v197_v25  ;;  %v210_v30 = vrot.slane %v209_v28, 2  ;;  %p392_p1 = scmp.ne.s32.totalorder %s239_s10, %s391_s3  ;;  %p396_p2 = scmp.lt.s32.totalorder %s239_s10, %s239_s10 }
 0x110   :  { %p397_p3 = scmp.lt.s32.totalorder %s395_s13, %s391_s3 }
 0x111   :  { %v211_v31 = vadd.f32 %v210_v30, %v209_v28  ;;  %v200_v32 = vrot.slane %v199_v29, 1 }
 0x112   :  { %p398_p4 = por %p397_p3, %p396_p2 }
 0x113   :  { %v201_v34 = vadd.f32 %v200_v32, %v199_v29  ;;  %v212_v35 = vrot.slane %v211_v31, 1 }
 0x114   :  { %p399_p5 = pnand %p398_p4, %p392_p1 }
 0x115   :  { %v202_v37 = vadd.f32 %v201_v34, %v194_v33  ;;  %v213_v38 = vadd.f32 %v212_v35, %v211_v31 }
 0x117   :  { %203 = vst [vmem:[#allocation8] sm:$0x1] %v202_v37  ;;  %v214_v39 = vadd.f32 %v213_v38, %v204_v36 }
 0x118   :  { %402 = shalt.err (!%p399_p5)
}
 0x119   :  { %241 = dma.vmem_to_hbm [thread:$0]  %s239_s10, 16, %s509_s4, [#allocation9]   ;;  %215 = vst [vmem:[#allocation10] sm:$0x1] %v214_v39 }
 0x11a   :  { %s411_s16 = scalar_lea.vmem %s249_s12, 16  ;;  %s415_s17 = scalar_lea.vmem %s249_s12, 32 }
 0x11b   :  { %p412_p6 = scmp.ne.s32.totalorder %s249_s12, %s411_s16  ;;  %p416_p7 = scmp.lt.s32.totalorder %s249_s12, %s249_s12 }
 0x11c   :  { %p417_p8 = scmp.lt.s32.totalorder %s415_s17, %s411_s16 }
 0x11e   :  { %p418_p9 = por %p417_p8, %p416_p7 }
 0x120   :  { %p419_p10 = pnand %p418_p9, %p412_p6 }
 0x122   :  { %422 = shalt.err (!%p419_p10)
}
 0x123   :  { %251 = dma.vmem_to_hbm [thread:$0]  %s249_s12, 16, %s510_s5, [#allocation9]  }
 0x124   :  { %435 = dma.done.wait [#allocation4], 128  }
 0x125   :  { %436 = vsyncadd [#allocation4], 4294967168 }
 0x126   :  { %437 = dma.done.wait [#allocation9], 32  }
 0x127   :  { %438 = vsyncadd [#allocation9], 4294967264 }
 0x128   :  { %261 = vsyncpa [#allocation3], 1 }
 0x129   :  { %262 = vsyncpa [#allocation6], 1 }
 0x12a   :  { %263 = vsyncpa [#allocation4], 1 }
 0x12b   :  { %264 = vsyncpa [#allocation9], 1 }

</bundles_post_ra>
